<compile_context>
chip_gen: v6e
topology: v6e:2x2x1
jax: 0.10.0
libtpu: 0.0.40
codegen_flags: <defaults>
</compile_context>

<pallas_src>
import functools

import jax
import jax.numpy as jnp
from jax import lax
from jax.experimental import pallas as pl
from jax.experimental.pallas import tpu as pltpu

_LANE = 128
_MAX_TS = 16384                    # lane-tile cap (v7x wants >= ~8-16k lanes per step)
_VMEM_BUDGET = 24 * 1024 * 1024    # target for the double-buffered block working set
_VMEM_LIMIT = 32 * 1024 * 1024     # explicit scoped-VMEM limit (covers v5e's 16 MiB default)


def _soft_threshold(x, theta):
    # soft(x, theta) = relu(x - theta) - relu(-x - theta)   (elementwise, VPU only)
    return jnp.maximum(x - theta, 0.0) - jnp.maximum(-x - theta, 0.0)


def ista_kernel(last_x_ref, y_ref, phi_ref, x_out_ref, *, step_size, theta):
    # Block shapes: last_x (1, F, TS), y (1, 1, TS), phi (F, TS), out (1, F, TS)
    F, TS = phi_ref.shape
    acc = jnp.float32

    # Pass 1: y_t = sum_f last_x[f] * phi[f]  (per-lane reduction over the frame axis).
    # Frame-by-frame so only O(TS) f32 values are live at once.
    def acc_body(f, y_t):
        lx = last_x_ref[0, pl.ds(f, 1), :].astype(acc)    # (1, TS)
        ph = phi_ref[pl.ds(f, 1), :].astype(acc)          # (1, TS)
        return y_t + lx * ph

    y_t = lax.fori_loop(0, F, acc_body, jnp.zeros((1, TS), acc), unroll=True)

    # step_size * residual, broadcast back over the frame axis in pass 2.
    r = step_size * (y_t - y_ref[0].astype(acc))          # (1, TS)

    # Pass 2: gradient step + proximal soft-threshold, frame by frame.
    # TODO(synk): the real denoiser is an injected nn.Module; modeled here as the
    # ISTA soft-threshold prox (zero "symmetric" term is built in the wrapper).
    def upd_body(f, carry):
        lx = last_x_ref[0, pl.ds(f, 1), :].astype(acc)
        ph = phi_ref[pl.ds(f, 1), :].astype(acc)
        xf = lx - r * ph
        x_out_ref[0, pl.ds(f, 1), :] = _soft_threshold(xf, theta).astype(x_out_ref.dtype)
        return carry

    lax.fori_loop(0, F, upd_body, 0, unroll=True)


def ista_forward(last_x, y, phi, *, step_size=0.5, theta=0.01):
    B, F, H, W = last_x.shape
    assert phi.shape == (F, H, W)
    assert y.shape == (B, H, W)

    S = H * W
    itemsize = jnp.dtype(last_x.dtype).itemsize

    # ---- lane-tile size: big enough to beat the ~0.35us per-step overhead, small ----
    # ---- enough that the double-buffered block set fits the VMEM budget.         ----
    if S <= _LANE:
        TS = S  # block dim == full array dim is always legal
    else:
        max_ts_by_vmem = _VMEM_BUDGET // (2 * (3 * F + 1) * itemsize)
        max_ts_by_vmem = max(_LANE, (max_ts_by_vmem // _LANE) * _LANE)
        TS = min(_MAX_TS, max_ts_by_vmem, pl.cdiv(S, _LANE) * _LANE)
        # Guarantee >= 2 spatial tiles on the parallel axis so both v7x TCs get work.
        if pl.cdiv(S, TS) < 2:
            TS = pl.cdiv(pl.cdiv(S, 2), _LANE) * _LANE
    n_s_tiles = pl.cdiv(S, TS)

    # No jnp.pad and no output slice: flattened views are free reshapes; a ragged last
    # spatial block is masked by Pallas on writeback, and the reduction is per-lane so
    # out-of-range tail lanes cannot contaminate valid output.
    last_x_f = last_x.reshape(B, F, S)
    y_f = y.reshape(B, 1, S)
    phi_f = phi.reshape(F, S)

    kernel = functools.partial(ista_kernel, step_size=step_size, theta=theta)

    cost = pl.CostEstimate(
        flops=4 * B * F * S,
        transcendentals=0,
        bytes_accessed=(2 * B * F + B + F) * S * itemsize,
    )

    x_flat = pl.pallas_call(
        kernel,
        out_shape=jax.ShapeDtypeStruct((B, F, S), last_x.dtype),
        grid=(n_s_tiles, B),  # batch innermost -> phi block index constant -> stays resident
        in_specs=[
            pl.BlockSpec((1, F, TS), lambda s, b: (b, 0, s)),   # last_x: one batch row / lane tile
            pl.BlockSpec((1, 1, TS), lambda s, b: (b, 0, s)),   # y: matching batch row / lane tile
            pl.BlockSpec((F, TS), lambda s, b: (0, s)),         # phi: shared, constant over b
        ],
        out_specs=pl.BlockSpec((1, F, TS), lambda s, b: (b, 0, s)),
        compiler_params=pltpu.CompilerParams(
            dimension_semantics=("parallel", "arbitrary"),
            vmem_limit_bytes=_VMEM_LIMIT,
        ),
        cost_estimate=cost,
    )(last_x_f, y_f, phi_f)

    x = x_flat.reshape(B, F, H, W)
    # Zero "symmetric" term produced host-side (no wasted HBM writes in the kernel).
    symmetric = jnp.zeros_like(x)

    # Mirror the PyTorch module's return signature: (x, y, phi, symmetric)
    return x, y, phi, symmetric


def ista_reference(last_x, y, phi, *, step_size=0.5, theta=0.01):
    """Pure-JAX reference mirroring the PyTorch forward exactly."""
    y_t = jnp.sum(last_x * phi[None], axis=1)                       # (B, H, W)
    x = last_x - step_size * (y_t - y)[:, None, :, :] * phi[None]   # (B, F, H, W)
    x_dn = _soft_threshold(x, theta)
    return x_dn, jnp.zeros_like(x_dn)


if __name__ == "__main__":
    B, F, H, W = 2, 8, 16, 16
    step_size = 0.5
    theta = 0.01

    key = jax.random.PRNGKey(0)
    k1, k2, k3 = jax.random.split(key, 3)
    last_x = jax.random.normal(k1, (B, F, H, W), dtype=jnp.float32)
    y = jax.random.normal(k2, (B, H, W), dtype=jnp.float32)
    phi = jax.random.uniform(k3, (F, H, W), dtype=jnp.float32)

    x_out, y_out, phi_out, sym_out = ista_forward(
        last_x, y, phi, step_size=step_size, theta=theta
    )
    jax.block_until_ready(x_out)
    jax.block_until_ready(sym_out)

    x_ref, sym_ref = ista_reference(last_x, y, phi, step_size=step_size, theta=theta)
    assert jnp.allclose(x_out, x_ref, atol=1e-5, rtol=1e-5), "x mismatch"
    assert jnp.allclose(sym_out, sym_ref, atol=1e-5, rtol=1e-5), "symmetric mismatch"
    assert x_out.shape == (B, F, H, W)
    assert jnp.allclose(y_out, y) and jnp.allclose(phi_out, phi)

    print("KERNEL_OK")
</pallas_src>

<mosaic_0001>
module attributes {stable_mosaic.version = 11 : i64} {
  func.func @ista_kernel(%arg0: i32, %arg1: i32, %arg2: memref<1x8x128xf32, #tpu.memory_space<vmem>>, %arg3: memref<1x1x128xf32, #tpu.memory_space<vmem>>, %arg4: memref<8x128xf32, #tpu.memory_space<vmem>>, %arg5: memref<1x8x128xf32, #tpu.memory_space<vmem>>) attributes {dimension_semantics = [#tpu.dimension_semantics<parallel>, #tpu.dimension_semantics<arbitrary>], iteration_bounds = array<i64: 2, 2>, scalar_prefetch = 0 : i64, scratch_operands = 0 : i64, tpu.core_type = #tpu.core_type<tc>, window_params = [{transform_indices = @transform_0, window_bounds = array<i64: 1, 8, 128>}, {transform_indices = @transform_1, window_bounds = array<i64: 1, 1, 128>}, {transform_indices = @transform_2, window_bounds = array<i64: 8, 128>}, {transform_indices = @transform_3, window_bounds = array<i64: 1, 8, 128>}]} {
    %cst = arith.constant 0.000000e+00 : f32
    %0 = vector.broadcast %cst : f32 to vector<1x128xf32>
    %c0_i32 = arith.constant 0 : i32
    %c0 = arith.constant 0 : index
    %1 = arith.index_cast %c0_i32 : i32 to index
    %c0_0 = arith.constant 0 : index
    %2 = vector.load %arg2[%c0, %1, %c0_0] : memref<1x8x128xf32, #tpu.memory_space<vmem>>, vector<1x1x128xf32>
    %3 = vector.shape_cast %2 : vector<1x1x128xf32> to vector<1x128xf32>
    %4 = arith.index_cast %c0_i32 : i32 to index
    %c0_1 = arith.constant 0 : index
    %5 = vector.load %arg4[%4, %c0_1] : memref<8x128xf32, #tpu.memory_space<vmem>>, vector<1x128xf32>
    %6 = arith.mulf %3, %5 : vector<1x128xf32>
    %7 = arith.addf %0, %6 : vector<1x128xf32>
    %c1_i32 = arith.constant 1 : i32
    %c0_2 = arith.constant 0 : index
    %8 = arith.index_cast %c1_i32 : i32 to index
    %c0_3 = arith.constant 0 : index
    %9 = vector.load %arg2[%c0_2, %8, %c0_3] : memref<1x8x128xf32, #tpu.memory_space<vmem>>, vector<1x1x128xf32>
    %10 = vector.shape_cast %9 : vector<1x1x128xf32> to vector<1x128xf32>
    %11 = arith.index_cast %c1_i32 : i32 to index
    %c0_4 = arith.constant 0 : index
    %12 = vector.load %arg4[%11, %c0_4] : memref<8x128xf32, #tpu.memory_space<vmem>>, vector<1x128xf32>
    %13 = arith.mulf %10, %12 : vector<1x128xf32>
    %14 = arith.addf %7, %13 : vector<1x128xf32>
    %c2_i32 = arith.constant 2 : i32
    %c0_5 = arith.constant 0 : index
    %15 = arith.index_cast %c2_i32 : i32 to index
    %c0_6 = arith.constant 0 : index
    %16 = vector.load %arg2[%c0_5, %15, %c0_6] : memref<1x8x128xf32, #tpu.memory_space<vmem>>, vector<1x1x128xf32>
    %17 = vector.shape_cast %16 : vector<1x1x128xf32> to vector<1x128xf32>
    %18 = arith.index_cast %c2_i32 : i32 to index
    %c0_7 = arith.constant 0 : index
    %19 = vector.load %arg4[%18, %c0_7] : memref<8x128xf32, #tpu.memory_space<vmem>>, vector<1x128xf32>
    %20 = arith.mulf %17, %19 : vector<1x128xf32>
    %21 = arith.addf %14, %20 : vector<1x128xf32>
    %c3_i32 = arith.constant 3 : i32
    %c0_8 = arith.constant 0 : index
    %22 = arith.index_cast %c3_i32 : i32 to index
    %c0_9 = arith.constant 0 : index
    %23 = vector.load %arg2[%c0_8, %22, %c0_9] : memref<1x8x128xf32, #tpu.memory_space<vmem>>, vector<1x1x128xf32>
    %24 = vector.shape_cast %23 : vector<1x1x128xf32> to vector<1x128xf32>
    %25 = arith.index_cast %c3_i32 : i32 to index
    %c0_10 = arith.constant 0 : index
    %26 = vector.load %arg4[%25, %c0_10] : memref<8x128xf32, #tpu.memory_space<vmem>>, vector<1x128xf32>
    %27 = arith.mulf %24, %26 : vector<1x128xf32>
    %28 = arith.addf %21, %27 : vector<1x128xf32>
    %c4_i32 = arith.constant 4 : i32
    %c0_11 = arith.constant 0 : index
    %29 = arith.index_cast %c4_i32 : i32 to index
    %c0_12 = arith.constant 0 : index
    %30 = vector.load %arg2[%c0_11, %29, %c0_12] : memref<1x8x128xf32, #tpu.memory_space<vmem>>, vector<1x1x128xf32>
    %31 = vector.shape_cast %30 : vector<1x1x128xf32> to vector<1x128xf32>
    %32 = arith.index_cast %c4_i32 : i32 to index
    %c0_13 = arith.constant 0 : index
    %33 = vector.load %arg4[%32, %c0_13] : memref<8x128xf32, #tpu.memory_space<vmem>>, vector<1x128xf32>
    %34 = arith.mulf %31, %33 : vector<1x128xf32>
    %35 = arith.addf %28, %34 : vector<1x128xf32>
    %c5_i32 = arith.constant 5 : i32
    %c0_14 = arith.constant 0 : index
    %36 = arith.index_cast %c5_i32 : i32 to index
    %c0_15 = arith.constant 0 : index
    %37 = vector.load %arg2[%c0_14, %36, %c0_15] : memref<1x8x128xf32, #tpu.memory_space<vmem>>, vector<1x1x128xf32>
    %38 = vector.shape_cast %37 : vector<1x1x128xf32> to vector<1x128xf32>
    %39 = arith.index_cast %c5_i32 : i32 to index
    %c0_16 = arith.constant 0 : index
    %40 = vector.load %arg4[%39, %c0_16] : memref<8x128xf32, #tpu.memory_space<vmem>>, vector<1x128xf32>
    %41 = arith.mulf %38, %40 : vector<1x128xf32>
    %42 = arith.addf %35, %41 : vector<1x128xf32>
    %c6_i32 = arith.constant 6 : i32
    %c0_17 = arith.constant 0 : index
    %43 = arith.index_cast %c6_i32 : i32 to index
    %c0_18 = arith.constant 0 : index
    %44 = vector.load %arg2[%c0_17, %43, %c0_18] : memref<1x8x128xf32, #tpu.memory_space<vmem>>, vector<1x1x128xf32>
    %45 = vector.shape_cast %44 : vector<1x1x128xf32> to vector<1x128xf32>
    %46 = arith.index_cast %c6_i32 : i32 to index
    %c0_19 = arith.constant 0 : index
    %47 = vector.load %arg4[%46, %c0_19] : memref<8x128xf32, #tpu.memory_space<vmem>>, vector<1x128xf32>
    %48 = arith.mulf %45, %47 : vector<1x128xf32>
    %49 = arith.addf %42, %48 : vector<1x128xf32>
    %c7_i32 = arith.constant 7 : i32
    %c0_20 = arith.constant 0 : index
    %50 = arith.index_cast %c7_i32 : i32 to index
    %c0_21 = arith.constant 0 : index
    %51 = vector.load %arg2[%c0_20, %50, %c0_21] : memref<1x8x128xf32, #tpu.memory_space<vmem>>, vector<1x1x128xf32>
    %52 = vector.shape_cast %51 : vector<1x1x128xf32> to vector<1x128xf32>
    %53 = arith.index_cast %c7_i32 : i32 to index
    %c0_22 = arith.constant 0 : index
    %54 = vector.load %arg4[%53, %c0_22] : memref<8x128xf32, #tpu.memory_space<vmem>>, vector<1x128xf32>
    %55 = arith.mulf %52, %54 : vector<1x128xf32>
    %56 = arith.addf %49, %55 : vector<1x128xf32>
    %c8_i32 = arith.constant 8 : i32
    %c0_23 = arith.constant 0 : index
    %c0_24 = arith.constant 0 : index
    %c0_25 = arith.constant 0 : index
    %57 = vector.load %arg3[%c0_23, %c0_24, %c0_25] : memref<1x1x128xf32, #tpu.memory_space<vmem>>, vector<1x1x128xf32>
    %58 = vector.shape_cast %57 : vector<1x1x128xf32> to vector<1x128xf32>
    %59 = arith.subf %56, %58 : vector<1x128xf32>
    %cst_26 = arith.constant 5.000000e-01 : f32
    %60 = vector.broadcast %cst_26 : f32 to vector<1x128xf32>
    %61 = arith.mulf %60, %59 : vector<1x128xf32>
    %c0_i32_27 = arith.constant 0 : i32
    %c0_28 = arith.constant 0 : index
    %62 = arith.index_cast %c0_i32_27 : i32 to index
    %c0_29 = arith.constant 0 : index
    %63 = vector.load %arg2[%c0_28, %62, %c0_29] : memref<1x8x128xf32, #tpu.memory_space<vmem>>, vector<1x1x128xf32>
    %64 = vector.shape_cast %63 : vector<1x1x128xf32> to vector<1x128xf32>
    %65 = arith.index_cast %c0_i32_27 : i32 to index
    %c0_30 = arith.constant 0 : index
    %66 = vector.load %arg4[%65, %c0_30] : memref<8x128xf32, #tpu.memory_space<vmem>>, vector<1x128xf32>
    %67 = arith.mulf %61, %66 : vector<1x128xf32>
    %68 = arith.subf %64, %67 : vector<1x128xf32>
    %cst_31 = arith.constant 0.00999999977 : f32
    %69 = vector.broadcast %cst_31 : f32 to vector<1x128xf32>
    %70 = arith.subf %68, %69 : vector<1x128xf32>
    %cst_32 = arith.constant 0.000000e+00 : f32
    %71 = vector.broadcast %cst_32 : f32 to vector<1x128xf32>
    %72 = arith.maximumf %70, %71 : vector<1x128xf32>
    %cst_33 = arith.constant 0.000000e+00 : f32
    %73 = vector.broadcast %cst_33 : f32 to vector<1x128xf32>
    %74 = arith.subf %73, %68 : vector<1x128xf32>
    %cst_34 = arith.constant 0.00999999977 : f32
    %75 = vector.broadcast %cst_34 : f32 to vector<1x128xf32>
    %76 = arith.subf %74, %75 : vector<1x128xf32>
    %cst_35 = arith.constant 0.000000e+00 : f32
    %77 = vector.broadcast %cst_35 : f32 to vector<1x128xf32>
    %78 = arith.maximumf %76, %77 : vector<1x128xf32>
    %79 = arith.subf %72, %78 : vector<1x128xf32>
    %c0_36 = arith.constant 0 : index
    %80 = arith.index_cast %c0_i32_27 : i32 to index
    %c0_37 = arith.constant 0 : index
    %81 = vector.load %arg5[%c0_36, %80, %c0_37] : memref<1x8x128xf32, #tpu.memory_space<vmem>>, vector<1x1x128xf32>
    %82 = vector.shape_cast %81 : vector<1x1x128xf32> to vector<1x128xf32>
    %83 = vector.shape_cast %79 : vector<1x128xf32> to vector<1x1x128xf32>
    tpu.vector_store %arg5[%c0_36, %80, %c0_37], %83 {strides = array<i32>} : memref<1x8x128xf32, #tpu.memory_space<vmem>>, vector<1x1x128xf32>,
    %c1_i32_38 = arith.constant 1 : i32
    %c0_39 = arith.constant 0 : index
    %84 = arith.index_cast %c1_i32_38 : i32 to index
    %c0_40 = arith.constant 0 : index
    %85 = vector.load %arg2[%c0_39, %84, %c0_40] : memref<1x8x128xf32, #tpu.memory_space<vmem>>, vector<1x1x128xf32>
    %86 = vector.shape_cast %85 : vector<1x1x128xf32> to vector<1x128xf32>
    %87 = arith.index_cast %c1_i32_38 : i32 to index
    %c0_41 = arith.constant 0 : index
    %88 = vector.load %arg4[%87, %c0_41] : memref<8x128xf32, #tpu.memory_space<vmem>>, vector<1x128xf32>
    %89 = arith.mulf %61, %88 : vector<1x128xf32>
    %90 = arith.subf %86, %89 : vector<1x128xf32>
    %cst_42 = arith.constant 0.00999999977 : f32
    %91 = vector.broadcast %cst_42 : f32 to vector<1x128xf32>
    %92 = arith.subf %90, %91 : vector<1x128xf32>
    %cst_43 = arith.constant 0.000000e+00 : f32
    %93 = vector.broadcast %cst_43 : f32 to vector<1x128xf32>
    %94 = arith.maximumf %92, %93 : vector<1x128xf32>
    %cst_44 = arith.constant 0.000000e+00 : f32
    %95 = vector.broadcast %cst_44 : f32 to vector<1x128xf32>
    %96 = arith.subf %95, %90 : vector<1x128xf32>
    %cst_45 = arith.constant 0.00999999977 : f32
    %97 = vector.broadcast %cst_45 : f32 to vector<1x128xf32>
    %98 = arith.subf %96, %97 : vector<1x128xf32>
    %cst_46 = arith.constant 0.000000e+00 : f32
    %99 = vector.broadcast %cst_46 : f32 to vector<1x128xf32>
    %100 = arith.maximumf %98, %99 : vector<1x128xf32>
    %101 = arith.subf %94, %100 : vector<1x128xf32>
    %c0_47 = arith.constant 0 : index
    %102 = arith.index_cast %c1_i32_38 : i32 to index
    %c0_48 = arith.constant 0 : index
    %103 = vector.load %arg5[%c0_47, %102, %c0_48] : memref<1x8x128xf32, #tpu.memory_space<vmem>>, vector<1x1x128xf32>
    %104 = vector.shape_cast %103 : vector<1x1x128xf32> to vector<1x128xf32>
    %105 = vector.shape_cast %101 : vector<1x128xf32> to vector<1x1x128xf32>
    tpu.vector_store %arg5[%c0_47, %102, %c0_48], %105 {strides = array<i32>} : memref<1x8x128xf32, #tpu.memory_space<vmem>>, vector<1x1x128xf32>,
    %c2_i32_49 = arith.constant 2 : i32
    %c0_50 = arith.constant 0 : index
    %106 = arith.index_cast %c2_i32_49 : i32 to index
    %c0_51 = arith.constant 0 : index
    %107 = vector.load %arg2[%c0_50, %106, %c0_51] : memref<1x8x128xf32, #tpu.memory_space<vmem>>, vector<1x1x128xf32>
    %108 = vector.shape_cast %107 : vector<1x1x128xf32> to vector<1x128xf32>
    %109 = arith.index_cast %c2_i32_49 : i32 to index
    %c0_52 = arith.constant 0 : index
    %110 = vector.load %arg4[%109, %c0_52] : memref<8x128xf32, #tpu.memory_space<vmem>>, vector<1x128xf32>
    %111 = arith.mulf %61, %110 : vector<1x128xf32>
    %112 = arith.subf %108, %111 : vector<1x128xf32>
    %cst_53 = arith.constant 0.00999999977 : f32
    %113 = vector.broadcast %cst_53 : f32 to vector<1x128xf32>
    %114 = arith.subf %112, %113 : vector<1x128xf32>
    %cst_54 = arith.constant 0.000000e+00 : f32
    %115 = vector.broadcast %cst_54 : f32 to vector<1x128xf32>
    %116 = arith.maximumf %114, %115 : vector<1x128xf32>
    %cst_55 = arith.constant 0.000000e+00 : f32
    %117 = vector.broadcast %cst_55 : f32 to vector<1x128xf32>
    %118 = arith.subf %117, %112 : vector<1x128xf32>
    %cst_56 = arith.constant 0.00999999977 : f32
    %119 = vector.broadcast %cst_56 : f32 to vector<1x128xf32>
    %120 = arith.subf %118, %119 : vector<1x128xf32>
    %cst_57 = arith.constant 0.000000e+00 : f32
    %121 = vector.broadcast %cst_57 : f32 to vector<1x128xf32>
    %122 = arith.maximumf %120, %121 : vector<1x128xf32>
    %123 = arith.subf %116, %122 : vector<1x128xf32>
    %c0_58 = arith.constant 0 : index
    %124 = arith.index_cast %c2_i32_49 : i32 to index
    %c0_59 = arith.constant 0 : index
    %125 = vector.load %arg5[%c0_58, %124, %c0_59] : memref<1x8x128xf32, #tpu.memory_space<vmem>>, vector<1x1x128xf32>
    %126 = vector.shape_cast %125 : vector<1x1x128xf32> to vector<1x128xf32>
    %127 = vector.shape_cast %123 : vector<1x128xf32> to vector<1x1x128xf32>
    tpu.vector_store %arg5[%c0_58, %124, %c0_59], %127 {strides = array<i32>} : memref<1x8x128xf32, #tpu.memory_space<vmem>>, vector<1x1x128xf32>,
    %c3_i32_60 = arith.constant 3 : i32
    %c0_61 = arith.constant 0 : index
    %128 = arith.index_cast %c3_i32_60 : i32 to index
    %c0_62 = arith.constant 0 : index
    %129 = vector.load %arg2[%c0_61, %128, %c0_62] : memref<1x8x128xf32, #tpu.memory_space<vmem>>, vector<1x1x128xf32>
    %130 = vector.shape_cast %129 : vector<1x1x128xf32> to vector<1x128xf32>
    %131 = arith.index_cast %c3_i32_60 : i32 to index
    %c0_63 = arith.constant 0 : index
    %132 = vector.load %arg4[%131, %c0_63] : memref<8x128xf32, #tpu.memory_space<vmem>>, vector<1x128xf32>
    %133 = arith.mulf %61, %132 : vector<1x128xf32>
    %134 = arith.subf %130, %133 : vector<1x128xf32>
    %cst_64 = arith.constant 0.00999999977 : f32
    %135 = vector.broadcast %cst_64 : f32 to vector<1x128xf32>
    %136 = arith.subf %134, %135 : vector<1x128xf32>
    %cst_65 = arith.constant 0.000000e+00 : f32
    %137 = vector.broadcast %cst_65 : f32 to vector<1x128xf32>
    %138 = arith.maximumf %136, %137 : vector<1x128xf32>
    %cst_66 = arith.constant 0.000000e+00 : f32
    %139 = vector.broadcast %cst_66 : f32 to vector<1x128xf32>
    %140 = arith.subf %139, %134 : vector<1x128xf32>
    %cst_67 = arith.constant 0.00999999977 : f32
    %141 = vector.broadcast %cst_67 : f32 to vector<1x128xf32>
    %142 = arith.subf %140, %141 : vector<1x128xf32>
    %cst_68 = arith.constant 0.000000e+00 : f32
    %143 = vector.broadcast %cst_68 : f32 to vector<1x128xf32>
    %144 = arith.maximumf %142, %143 : vector<1x128xf32>
    %145 = arith.subf %138, %144 : vector<1x128xf32>
    %c0_69 = arith.constant 0 : index
    %146 = arith.index_cast %c3_i32_60 : i32 to index
    %c0_70 = arith.constant 0 : index
    %147 = vector.load %arg5[%c0_69, %146, %c0_70] : memref<1x8x128xf32, #tpu.memory_space<vmem>>, vector<1x1x128xf32>
    %148 = vector.shape_cast %147 : vector<1x1x128xf32> to vector<1x128xf32>
    %149 = vector.shape_cast %145 : vector<1x128xf32> to vector<1x1x128xf32>
    tpu.vector_store %arg5[%c0_69, %146, %c0_70], %149 {strides = array<i32>} : memref<1x8x128xf32, #tpu.memory_space<vmem>>, vector<1x1x128xf32>,
    %c4_i32_71 = arith.constant 4 : i32
    %c0_72 = arith.constant 0 : index
    %150 = arith.index_cast %c4_i32_71 : i32 to index
    %c0_73 = arith.constant 0 : index
    %151 = vector.load %arg2[%c0_72, %150, %c0_73] : memref<1x8x128xf32, #tpu.memory_space<vmem>>, vector<1x1x128xf32>
    %152 = vector.shape_cast %151 : vector<1x1x128xf32> to vector<1x128xf32>
    %153 = arith.index_cast %c4_i32_71 : i32 to index
    %c0_74 = arith.constant 0 : index
    %154 = vector.load %arg4[%153, %c0_74] : memref<8x128xf32, #tpu.memory_space<vmem>>, vector<1x128xf32>
    %155 = arith.mulf %61, %154 : vector<1x128xf32>
    %156 = arith.subf %152, %155 : vector<1x128xf32>
    %cst_75 = arith.constant 0.00999999977 : f32
    %157 = vector.broadcast %cst_75 : f32 to vector<1x128xf32>
    %158 = arith.subf %156, %157 : vector<1x128xf32>
    %cst_76 = arith.constant 0.000000e+00 : f32
    %159 = vector.broadcast %cst_76 : f32 to vector<1x128xf32>
    %160 = arith.maximumf %158, %159 : vector<1x128xf32>
    %cst_77 = arith.constant 0.000000e+00 : f32
    %161 = vector.broadcast %cst_77 : f32 to vector<1x128xf32>
    %162 = arith.subf %161, %156 : vector<1x128xf32>
    %cst_78 = arith.constant 0.00999999977 : f32
    %163 = vector.broadcast %cst_78 : f32 to vector<1x128xf32>
    %164 = arith.subf %162, %163 : vector<1x128xf32>
    %cst_79 = arith.constant 0.000000e+00 : f32
    %165 = vector.broadcast %cst_79 : f32 to vector<1x128xf32>
    %166 = arith.maximumf %164, %165 : vector<1x128xf32>
    %167 = arith.subf %160, %166 : vector<1x128xf32>
    %c0_80 = arith.constant 0 : index
    %168 = arith.index_cast %c4_i32_71 : i32 to index
    %c0_81 = arith.constant 0 : index
    %169 = vector.load %arg5[%c0_80, %168, %c0_81] : memref<1x8x128xf32, #tpu.memory_space<vmem>>, vector<1x1x128xf32>
    %170 = vector.shape_cast %169 : vector<1x1x128xf32> to vector<1x128xf32>
    %171 = vector.shape_cast %167 : vector<1x128xf32> to vector<1x1x128xf32>
    tpu.vector_store %arg5[%c0_80, %168, %c0_81], %171 {strides = array<i32>} : memref<1x8x128xf32, #tpu.memory_space<vmem>>, vector<1x1x128xf32>,
    %c5_i32_82 = arith.constant 5 : i32
    %c0_83 = arith.constant 0 : index
    %172 = arith.index_cast %c5_i32_82 : i32 to index
    %c0_84 = arith.constant 0 : index
    %173 = vector.load %arg2[%c0_83, %172, %c0_84] : memref<1x8x128xf32, #tpu.memory_space<vmem>>, vector<1x1x128xf32>
    %174 = vector.shape_cast %173 : vector<1x1x128xf32> to vector<1x128xf32>
    %175 = arith.index_cast %c5_i32_82 : i32 to index
    %c0_85 = arith.constant 0 : index
    %176 = vector.load %arg4[%175, %c0_85] : memref<8x128xf32, #tpu.memory_space<vmem>>, vector<1x128xf32>
    %177 = arith.mulf %61, %176 : vector<1x128xf32>
    %178 = arith.subf %174, %177 : vector<1x128xf32>
    %cst_86 = arith.constant 0.00999999977 : f32
    %179 = vector.broadcast %cst_86 : f32 to vector<1x128xf32>
    %180 = arith.subf %178, %179 : vector<1x128xf32>
    %cst_87 = arith.constant 0.000000e+00 : f32
    %181 = vector.broadcast %cst_87 : f32 to vector<1x128xf32>
    %182 = arith.maximumf %180, %181 : vector<1x128xf32>
    %cst_88 = arith.constant 0.000000e+00 : f32
    %183 = vector.broadcast %cst_88 : f32 to vector<1x128xf32>
    %184 = arith.subf %183, %178 : vector<1x128xf32>
    %cst_89 = arith.constant 0.00999999977 : f32
    %185 = vector.broadcast %cst_89 : f32 to vector<1x128xf32>
    %186 = arith.subf %184, %185 : vector<1x128xf32>
    %cst_90 = arith.constant 0.000000e+00 : f32
    %187 = vector.broadcast %cst_90 : f32 to vector<1x128xf32>
    %188 = arith.maximumf %186, %187 : vector<1x128xf32>
    %189 = arith.subf %182, %188 : vector<1x128xf32>
    %c0_91 = arith.constant 0 : index
    %190 = arith.index_cast %c5_i32_82 : i32 to index
    %c0_92 = arith.constant 0 : index
    %191 = vector.load %arg5[%c0_91, %190, %c0_92] : memref<1x8x128xf32, #tpu.memory_space<vmem>>, vector<1x1x128xf32>
    %192 = vector.shape_cast %191 : vector<1x1x128xf32> to vector<1x128xf32>
    %193 = vector.shape_cast %189 : vector<1x128xf32> to vector<1x1x128xf32>
    tpu.vector_store %arg5[%c0_91, %190, %c0_92], %193 {strides = array<i32>} : memref<1x8x128xf32, #tpu.memory_space<vmem>>, vector<1x1x128xf32>,
    %c6_i32_93 = arith.constant 6 : i32
    %c0_94 = arith.constant 0 : index
    %194 = arith.index_cast %c6_i32_93 : i32 to index
    %c0_95 = arith.constant 0 : index
    %195 = vector.load %arg2[%c0_94, %194, %c0_95] : memref<1x8x128xf32, #tpu.memory_space<vmem>>, vector<1x1x128xf32>
    %196 = vector.shape_cast %195 : vector<1x1x128xf32> to vector<1x128xf32>
    %197 = arith.index_cast %c6_i32_93 : i32 to index
    %c0_96 = arith.constant 0 : index
    %198 = vector.load %arg4[%197, %c0_96] : memref<8x128xf32, #tpu.memory_space<vmem>>, vector<1x128xf32>
    %199 = arith.mulf %61, %198 : vector<1x128xf32>
    %200 = arith.subf %196, %199 : vector<1x128xf32>
    %cst_97 = arith.constant 0.00999999977 : f32
    %201 = vector.broadcast %cst_97 : f32 to vector<1x128xf32>
    %202 = arith.subf %200, %201 : vector<1x128xf32>
    %cst_98 = arith.constant 0.000000e+00 : f32
    %203 = vector.broadcast %cst_98 : f32 to vector<1x128xf32>
    %204 = arith.maximumf %202, %203 : vector<1x128xf32>
    %cst_99 = arith.constant 0.000000e+00 : f32
    %205 = vector.broadcast %cst_99 : f32 to vector<1x128xf32>
    %206 = arith.subf %205, %200 : vector<1x128xf32>
    %cst_100 = arith.constant 0.00999999977 : f32
    %207 = vector.broadcast %cst_100 : f32 to vector<1x128xf32>
    %208 = arith.subf %206, %207 : vector<1x128xf32>
    %cst_101 = arith.constant 0.000000e+00 : f32
    %209 = vector.broadcast %cst_101 : f32 to vector<1x128xf32>
    %210 = arith.maximumf %208, %209 : vector<1x128xf32>
    %211 = arith.subf %204, %210 : vector<1x128xf32>
    %c0_102 = arith.constant 0 : index
    %212 = arith.index_cast %c6_i32_93 : i32 to index
    %c0_103 = arith.constant 0 : index
    %213 = vector.load %arg5[%c0_102, %212, %c0_103] : memref<1x8x128xf32, #tpu.memory_space<vmem>>, vector<1x1x128xf32>
    %214 = vector.shape_cast %213 : vector<1x1x128xf32> to vector<1x128xf32>
    %215 = vector.shape_cast %211 : vector<1x128xf32> to vector<1x1x128xf32>
    tpu.vector_store %arg5[%c0_102, %212, %c0_103], %215 {strides = array<i32>} : memref<1x8x128xf32, #tpu.memory_space<vmem>>, vector<1x1x128xf32>,
    %c7_i32_104 = arith.constant 7 : i32
    %c0_105 = arith.constant 0 : index
    %216 = arith.index_cast %c7_i32_104 : i32 to index
    %c0_106 = arith.constant 0 : index
    %217 = vector.load %arg2[%c0_105, %216, %c0_106] : memref<1x8x128xf32, #tpu.memory_space<vmem>>, vector<1x1x128xf32>
    %218 = vector.shape_cast %217 : vector<1x1x128xf32> to vector<1x128xf32>
    %219 = arith.index_cast %c7_i32_104 : i32 to index
    %c0_107 = arith.constant 0 : index
    %220 = vector.load %arg4[%219, %c0_107] : memref<8x128xf32, #tpu.memory_space<vmem>>, vector<1x128xf32>
    %221 = arith.mulf %61, %220 : vector<1x128xf32>
    %222 = arith.subf %218, %221 : vector<1x128xf32>
    %cst_108 = arith.constant 0.00999999977 : f32
    %223 = vector.broadcast %cst_108 : f32 to vector<1x128xf32>
    %224 = arith.subf %222, %223 : vector<1x128xf32>
    %cst_109 = arith.constant 0.000000e+00 : f32
    %225 = vector.broadcast %cst_109 : f32 to vector<1x128xf32>
    %226 = arith.maximumf %224, %225 : vector<1x128xf32>
    %cst_110 = arith.constant 0.000000e+00 : f32
    %227 = vector.broadcast %cst_110 : f32 to vector<1x128xf32>
    %228 = arith.subf %227, %222 : vector<1x128xf32>
    %cst_111 = arith.constant 0.00999999977 : f32
    %229 = vector.broadcast %cst_111 : f32 to vector<1x128xf32>
    %230 = arith.subf %228, %229 : vector<1x128xf32>
    %cst_112 = arith.constant 0.000000e+00 : f32
    %231 = vector.broadcast %cst_112 : f32 to vector<1x128xf32>
    %232 = arith.maximumf %230, %231 : vector<1x128xf32>
    %233 = arith.subf %226, %232 : vector<1x128xf32>
    %c0_113 = arith.constant 0 : index
    %234 = arith.index_cast %c7_i32_104 : i32 to index
    %c0_114 = arith.constant 0 : index
    %235 = vector.load %arg5[%c0_113, %234, %c0_114] : memref<1x8x128xf32, #tpu.memory_space<vmem>>, vector<1x1x128xf32>
    %236 = vector.shape_cast %235 : vector<1x1x128xf32> to vector<1x128xf32>
    %237 = vector.shape_cast %233 : vector<1x128xf32> to vector<1x1x128xf32>
    tpu.vector_store %arg5[%c0_113, %234, %c0_114], %237 {strides = array<i32>} : memref<1x8x128xf32, #tpu.memory_space<vmem>>, vector<1x1x128xf32>,
    %c8_i32_115 = arith.constant 8 : i32
    return
  }
  func.func @transform_0(%arg0: i32, %arg1: i32) -> (i32, i32, i32) {
    %c0_i32 = arith.constant 0 : i32
    %c0_i32_0 = arith.constant 0 : i32
    return %arg1, %c0_i32, %arg0 : i32, i32, i32
  }
  func.func @transform_1(%arg0: i32, %arg1: i32) -> (i32, i32, i32) {
    %c0_i32 = arith.constant 0 : i32
    %c0_i32_0 = arith.constant 0 : i32
    return %arg1, %c0_i32, %arg0 : i32, i32, i32
  }
  func.func @transform_2(%arg0: i32, %arg1: i32) -> (i32, i32) {
    %c0_i32 = arith.constant 0 : i32
    %c0_i32_0 = arith.constant 0 : i32
    return %c0_i32, %arg0 : i32, i32
  }
  func.func @transform_3(%arg0: i32, %arg1: i32) -> (i32, i32, i32) {
    %c0_i32 = arith.constant 0 : i32
    %c0_i32_0 = arith.constant 0 : i32
    return %arg1, %c0_i32, %arg0 : i32, i32, i32
  }
}

</mosaic_0001>

<bundles_post_ra>
// kernel: tpu_custom_call.1
= control target key start
LH: loop header
LB: loop body
LE: loop exit
PB: predicated region body
PF: predicated region fallthrough
CT: control target
= control target key end

     0   :  { %s1237_s0 = inlined_call_operand.hbm [shape: f32[2,8,256], index: 0, kind: input, shape index: {}]   ;;  %s1238_s1 = inlined_call_operand.hbm [shape: f32[2,1,256], index: 1, kind: input, shape index: {}]   ;;  %s1239_s2 = inlined_call_operand.hbm [shape: f32[8,256], index: 2, kind: input, shape index: {}]   ;;  %s1240_s3 = inlined_call_operand.hbm [shape: f32[2,8,256], index: 3, kind: output, shape index: {}]  }
   0x1   :  { %1252 = sst [smem:[#allocation20_spill]] %s1238_s1 }
   0x2   :  { %1253 = sst [smem:[#allocation21_spill]] %s1240_s3 }
   0x3   :  { %8 = vsyncpa [#allocation3], 0 }
   0x4   :  { %10 = vsyncpa [#allocation3 + $0x1], 0 }
   0x5   :  { %11 = vsyncpa [#allocation6], 0 }
   0x6   :  { %13 = vsyncpa [#allocation6 + $0x1], 0 }
   0x7   :  { %14 = vsyncpa [#allocation4], 0 }
   0x8   :  { %16 = vsyncpa [#allocation4 + $0x1], 0  ;;  %s926_s12 = smov 0   ;;  %s928_s13 = smov 0  }
   0x9   :  { %s930_s14 = smov 0   ;;  %s932_s15 = smov 0  }
   0xa   :  { %s934_s16 = smov 0   ;;  %s936_s17 = smov 0  }
   0xb   :  { %s938_s18 = smov 0   ;;  %s940_s19 = smov 0  }
   0xc   :  { %s942_s20 = smov 0   ;;  %s944_s21 = smov 0  }
   0xd   :  { %s946_s22 = smov 0  }
   0xe LB: > { %1254 = sst [smem:[#allocation13_spill]] %s872_s15  ;;  %s982_s23 = sadd.s32 4294967295, %s900_s22   ;;  %s900_s22 = sphi %s946_s22, %s22_s22   ;;  %s896_s21 = sphi %s944_s21, %s1290_s21   ;;  %s892_s20 = sphi %s942_s20, %s1282_s20   ;;  %s888_s19 = sphi %s940_s19, %s1289_s19   ;;  %s884_s18 = sphi %s938_s18, %s1281_s18   ;;  %s880_s17 = sphi %s936_s17, %s1280_s17   ;;  %s876_s16 = sphi %s934_s16, %s1288_s16   ;;  %s872_s15 = sphi %s932_s15, %s1287_s15   ;;  %s868_s14 = sphi %s930_s14, %s1286_s14   ;;  %s864_s13 = sphi %s928_s13, %s1285_s13   ;;  %s860_s12 = sphi %s926_s12, %s1284_s12  }
   0xf   : > { %1255 = sst [smem:[#allocation14_spill]] %s880_s17  ;;  %s541_s24 = sadd.s32 4294967294, %s900_s22  }
  0x10   : > { %1256 = sst [smem:[#allocation15_spill]] %s892_s20  ;;  %s31_s25 = sadd.s32 1, %s892_s20 }
  0x11   : > { %s34_s26 = sadd.s32 1, %s896_s21  ;;  %p32_p0 = scmp.ge.s32.totalorder %s31_s25, 2 }
  0x12   : > { %s43_s27 = sadd.s32 1, %s880_s17  ;;  %p50_p1 = scmp.ne.s32.totalorder %s880_s17, %s876_s16 }
  0x13   : > { %p1249_p2 = scmp.eq.s32.totalorder %s900_s22, 0  ;;  %s1292_s25 = smov (%p32_p0, %s31_s25), 0 }
  0x14   : > { %1257 = sst [smem:[#allocation16_spill]] %s1292_s25  ;;  %s1294_s26 = smov (!%p32_p0, %s34_s26), %s896_s21 }
  0x15   : > { %s38_s28 = ssub.s32 %s892_s20, %s1292_s25  ;;  %p998_p3 = por %p1249_p2, %p50_p1 }
  0x16   : > { %p36_p4 = scmp.ge.s32.totalorder %s1294_s26, 2  ;;  %p56_p5 = scmp.ne.s32.totalorder %s876_s16, %s872_s15 }
  0x17   : > { %p1248_p6 = scmp.eq.s32.totalorder %s982_s23, 0  ;;  %p136_p7 = scmp.eq.s32.totalorder %s982_s23, 3 }
  0x18   : > { %s1296_s26 = smov (%p36_p4, %s1294_s26), 0  ;;  %p142_p10 = scmp.eq.s32.totalorder %s541_s24, 3 }
  0x19   : > { %1259 = sst [smem:[#allocation17_spill]] %s1296_s26  ;;  %p1010_p8 = por %p1248_p6, %p56_p5 }
  0x1a   : > { %p1014_p9 = por %p136_p7, %p50_p1  ;;  %s1020_s5 = ssub.s32 %s896_s21, %s1296_s26 }
  0x1b   : > { %s40_s6 = sor.u32 %s1020_s5, %s38_s28  ;;  %p95_p11 = scmp.eq.s32.totalorder %s1020_s5, 0 }
  0x1c   : > { %s1261_s4 = scalar_select %p1014_p9, 1, 0 }
  0x1d   : > { %p41_p12 = scmp.eq.s32.totalorder %s40_s6, 0  ;;  %p1024_p13 = por %p142_p10, %p56_p5 }
  0x1e   : > { %p1247_p0 = scmp.lt.s32.totalorder %s900_s22, 4  ;;  %s1033_s9 = sand.u32 1, %s880_s17  }
  0x1f   : > { %s1262_s7 = scalar_select %p1024_p13, 1, 0 }
  0x20   : > { %s1030_s8 = scalar_select %p41_p12, %s880_s17, %s43_s27  }
  0x21   : > { %1263 = sst [smem:[#allocation18_spill]] %s1262_s7  ;;  %s545_s10 = sshll.u32 %s892_s20, 1 }
  0x22   : > { %1264 = sst [smem:[#allocation19_spill]] %s1030_s8  ;;  %s1037_s11 = sadd.s32 %s896_s21, %s545_s10 }
  0x23   : > { %p1043_p1 = pnand %p1247_p0, %p998_p3  ;;  %s182_s28 = sand.u32 1, %s900_s22  }
  0x24   : > { %s548_s6 = sshll.u32 %s1037_s11, 4  ;;  %s185_s26 = scalar_lea.vmem [#allocation5], %s1033_s9 }
  0x25   : > { %s194_s27 = sshll.u32 %s185_s26, 4  ;;  %s1266_s1 = sld [smem:[#allocation20_spill]]  ;;  %s195_s27 = int_to_ptr.vmem [resolvable:$true] %s194_s27 }
  0x26   : > { %s1053_s10 = scalar_lea.sflag [#allocation6], %s182_s28  ;;  %p690_p4 = pneg %p1043_p1 }
  0x27   : > { %s701_s29 = scalar_lea.vmem %s195_s27, 16  ;;  %s902_s20 = smov [#allocation5]  }
  0x28   : > { %p702_p3 = scmp.ne.s32.totalorder %s195_s27, %s701_s29  ;;  %s706_s7 = sshll.u32 %s902_s20, 4  ;;  %s707_s7 = int_to_ptr.vmem [resolvable:$false] %s706_s7 }
  0x29   : > { %s708_s15 = scalar_lea.vmem %s707_s7, 32  ;;  %p709_p10 = scmp.lt.s32.totalorder %s195_s27, %s707_s7 }
  0x2a   : > { %p704_p5 = pnand %p702_p3, %p690_p4  ;;  %p710_p12 = scmp.lt.s32.totalorder %s708_s15, %s701_s29 }
  0x2b   : > { %s192_s17 = scalar_lea.hbm %s1266_s1, %s548_s6 }
  0x2c   : > { %p705_p7 = pneg %p704_p5  ;;  %p711_p0 = por %p710_p12, %p709_p10 }
  0x2e   : > { %p712_p6 = pnand %p711_p0, %p705_p7 }
  0x30   : > { %715 = shalt.err (!%p712_p6)
}
  0x31   : > { %590 = dma.hbm_to_vmem [thread:$0]  (!%p1043_p1), %s192_s17, 16, %s195_s27, %s1053_s10  }
  0x32   : > { %p551_p3 = scmp.ge.s32.totalorder %s900_s22, 1  ;;  %p217_p5 = scmp.lt.s32.totalorder %s900_s22, 5 }
  0x33   : > { %s544_s15 = sshll.u32 %s1033_s9, 3  ;;  %s546_s25 = sshll.u32 %s1037_s11, 7 }
  0x34   : > { %p1065_p2 = pnand %p551_p3, %p217_p5  ;;  %s173_s8 = scalar_lea.hbm %s1237_s0, %s546_s25 }
  0x35   : > { %s166_s28 = scalar_lea.vmem [#allocation2], %s544_s15  ;;  %s163_s29 = scalar_lea.sflag [#allocation3], %s1033_s9 }
  0x36   : > { %s175_s6 = sshll.u32 %s166_s28, 4  ;;  %s903_s17 = smov [#allocation2]   ;;  %s176_s6 = int_to_ptr.vmem [resolvable:$true] %s175_s6 }
  0x37   : > { %s729_s1 = scalar_lea.vmem %s176_s6, 128  ;;  %s734_s27 = sshll.u32 %s903_s17, 4  ;;  %s735_s27 = int_to_ptr.vmem [resolvable:$false] %s734_s27 }
  0x38   : > { %p730_p6 = scmp.ne.s32.totalorder %s176_s6, %s729_s1  ;;  %s736_s3 = scalar_lea.vmem %s735_s27, 256 }
  0x39   : > { %p737_p10 = scmp.lt.s32.totalorder %s176_s6, %s735_s27  ;;  %p738_p12 = scmp.lt.s32.totalorder %s736_s3, %s729_s1 }
  0x3a   : > { %p732_p0 = pnand %p730_p6, %p690_p4 }
  0x3b   : > { %p739_p3 = por %p738_p12, %p737_p10 }
  0x3c   : > { %p733_p7 = pneg %p732_p0 }
  0x3e   : > { %p740_p5 = pnand %p739_p3, %p733_p7 }
  0x40   : > { %743 = shalt.err (!%p740_p5)
}
  0x41   : > { %587 = dma.hbm_to_vmem [thread:$0]  (!%p1043_p1), %s173_s8, 128, %s176_s6, %s163_s29  }
  0x42   : > { %s97_s9 = sadd.s32 1, %s868_s14  ;;  %p104_p4 = scmp.ne.s32.totalorder %s868_s14, %s864_s13 }
  0x43   : > { %s1086_s1 = scalar_select %p95_p11, %s868_s14, %s97_s9  }
  0x44   : > { %p1268_p6 = scmp.eq.s32.totalorder %s900_s22, 0  ;;  %p110_p7 = scmp.ne.s32.totalorder %s864_s13, %s860_s12 }
  0x45   : > { %s203_s3 = sand.u32 1, %s868_s14   ;;  %s550_s11 = sshll.u32 %s896_s21, 7 }
  0x46   : > { %p106_p0 = por %p104_p4, %p1268_p6  ;;  %p1269_p10 = scmp.eq.s32.totalorder %s982_s23, 0 }
  0x47   : > { %s549_s15 = sshll.u32 %s203_s3, 3  ;;  %s210_s7 = scalar_lea.hbm %s1239_s2, %s550_s11 }
  0x48   : > { %p1096_p12 = por %p110_p7, %p1269_p10  ;;  %s205_s8 = scalar_lea.vmem [#allocation7], %s549_s15 }
  0x49   : > { %s212_s28 = sshll.u32 %s205_s8, 4  ;;  %p1271_p1 = scmp.lt.s32.totalorder %s900_s22, 4  ;;  %s213_s28 = int_to_ptr.vmem [resolvable:$true] %s212_s28 }
  0x4a   : > { %s757_s12 = scalar_lea.vmem %s213_s28, 128  ;;  %s904_s6 = smov [#allocation7]  }
  0x4b   : > { %p1105_p11 = pnand %p1271_p1, %p106_p0  ;;  %p758_p5 = scmp.ne.s32.totalorder %s213_s28, %s757_s12 }
  0x4c   : > { %s762_s29 = sshll.u32 %s904_s6, 4  ;;  %s763_s29 = int_to_ptr.vmem [resolvable:$false] %s762_s29 }
  0x4d   : > { %p746_p3 = pneg %p1105_p11  ;;  %s764_s17 = scalar_lea.vmem %s763_s29, 256 }
  0x4e   : > { %p765_p7 = scmp.lt.s32.totalorder %s213_s28, %s763_s29  ;;  %p766_p10 = scmp.lt.s32.totalorder %s764_s17, %s757_s12 }
  0x4f   : > { %p760_p4 = pnand %p758_p5, %p746_p3 }
  0x50   : > { %p767_p13 = por %p766_p10, %p765_p7 }
  0x51   : > { %p761_p6 = pneg %p760_p4 }
  0x53   : > { %p768_p9 = pnand %p767_p13, %p761_p6 }
  0x55   : > { %771 = shalt.err (!%p768_p9)
}
  0x56   : > { %593 = dma.hbm_to_vmem [thread:$0]  (!%p1105_p11), %s210_s7, 128, %s213_s28, %s1053_s10  }
  0x57   : > { %221 = sbr.rel (%p1065_p2) target bundleno = 157 (0x9d), region = 32  ;;  %s1117_s27 = sand.u32 (!%p1065_p2), 1, %s876_s16  }
  0x58   : > { %s552_s9 = sshll.u32 (!%p1065_p2), %s1117_s27, 3  ;;  %s224_s3 = scalar_lea.sflag (!%p1065_p2), [#allocation3], %s1117_s27 }
  0x59   : > { %s1123_s11 = scalar_lea.vmem (!%p1065_p2), [#allocation2], %s552_s9 }
  0x5c   : > { %843 = dma.done.wait (%p1010_p8), %s224_s3, 128  }
  0x5d   : > { %845 = vsyncadd (%p1010_p8), %s224_s3, 4294967168  ;;  %s232_s10 = sand.u32 1, %s982_s23   ;;  %s235_s15 = scalar_lea.vmem [#allocation5], %s1117_s27 }
  0x5e   : > { %s233_s20 = scalar_lea.sflag [#allocation6], %s232_s10 }
  0x5f   : > { %847 = dma.done.wait (%p1010_p8), %s233_s20, 16  }
  0x60   : > { %849 = vsyncadd (%p1010_p8), %s233_s20, 4294967280  ;;  %s242_s25 = sand.u32 1, %s864_s13  }
  0x61   : > { %s553_s26 = sshll.u32 %s242_s25, 3 }
  0x62   : > { %s1136_s7 = scalar_lea.vmem [#allocation7], %s553_s26 }
  0x63   : > { %851 = dma.done.wait (%p1096_p12), %s233_s20, 128  }
  0x64   : > { %853 = vsyncadd (%p1096_p12), %s233_s20, 4294967168  ;;  %v276_v0 = vld [vmem:[%s1123_s11] sm:$0x1]  ;;  %v277_v1 = vld [vmem:[%s1136_s7] sm:$0x1]  ;;  %s572_s23 = sshll.u32 %s884_s18, 1 }
  0x65   : > { %v280_v2 = vld [vmem:[%s1123_s11 + $0x1] sm:$0x1]  ;;  %v278_v3 = vmul.f32 %v277_v1, %v276_v0  ;;  %v281_v4 = vld [vmem:[%s1136_s7 + $0x1] sm:$0x1]  ;;  %v284_v5 = vld [vmem:[%s1123_s11 + $0x2] sm:$0x1]  ;;  %s409_s24 = sadd.s32 %s888_s19, %s572_s23 }
  0x66   : > { %v285_v6 = vld [vmem:[%s1136_s7 + $0x2] sm:$0x1]  ;;  %v282_v7 = vmul.f32 %v281_v4, %v280_v2  ;;  %v288_v9 = vld [vmem:[%s1123_s11 + $0x3] sm:$0x1]  ;;  %v289_v10 = vld [vmem:[%s1136_s7 + $0x3] sm:$0x1] }
  0x67   : > { %v286_v8 = vmul.f32 %v285_v6, %v284_v5  ;;  %v292_v11 = vld [vmem:[%s1123_s11 + $0x4] sm:$0x1]  ;;  %v293_v12 = vld [vmem:[%s1136_s7 + $0x4] sm:$0x1]  ;;  %v290_v14 = vmul.f32 %v289_v10, %v288_v9  ;;  %v296_v15 = vld [vmem:[%s1123_s11 + $0x5] sm:$0x1] }
  0x68   : > { %v283_v13 = vadd.f32 %v282_v7, %v278_v3  ;;  %v297_v16 = vld [vmem:[%s1136_s7 + $0x5] sm:$0x1]  ;;  %v294_v18 = vmul.f32 %v293_v12, %v292_v11  ;;  %v300_v19 = vld [vmem:[%s1123_s11 + $0x6] sm:$0x1]  ;;  %v301_v20 = vld [vmem:[%s1136_s7 + $0x6] sm:$0x1] }
  0x69   : > { %v298_v22 = vmul.f32 %v297_v16, %v296_v15  ;;  %v304_v23 = vld [vmem:[%s1123_s11 + $0x7] sm:$0x1]  ;;  %v305_v24 = vld [vmem:[%s1136_s7 + $0x7] sm:$0x1]  ;;  %v302_v26 = vmul.f32 %v301_v20, %v300_v19  ;;  %v308_v30 = vld [vmem:[%s235_s15] sm:$0x1] }
  0x6a   : > { %v287_v17 = vadd.f32 %v286_v8, %v283_v13  ;;  %v306_v28 = vmul.f32 %v305_v24, %v304_v23  ;;  %v321_v33 = vld [vmem:[%s1136_s7 + $0x1] sm:$0x1]  ;;  %v332_v34 = vld [vmem:[%s1136_s7 + $0x2] sm:$0x1]  ;;  %v320_v35 = vld [vmem:[%s1123_s11 + $0x1] sm:$0x1] }
  0x6b   : > { %v343_v36 = vld [vmem:[%s1136_s7 + $0x3] sm:$0x1]  ;;  %v354_v37 = vld [vmem:[%s1136_s7 + $0x4] sm:$0x1]  ;;  %v365_v38 = vld [vmem:[%s1136_s7 + $0x5] sm:$0x1] }
  0x6c   : > { %v291_v21 = vadd.f32 %v290_v14, %v287_v17  ;;  %v376_v40 = vld [vmem:[%s1136_s7 + $0x6] sm:$0x1]  ;;  %v387_v41 = vld [vmem:[%s1136_s7 + $0x7] sm:$0x1]  ;;  %v331_v42 = vld [vmem:[%s1123_s11 + $0x2] sm:$0x1] }
  0x6d   : > { %v342_v43 = vld [vmem:[%s1123_s11 + $0x3] sm:$0x1]  ;;  %v353_v44 = vld [vmem:[%s1123_s11 + $0x4] sm:$0x1]  ;;  %v364_v49 = vld [vmem:[%s1123_s11 + $0x5] sm:$0x1] }
  0x6e   : > { %v295_v25 = vadd.f32 %v294_v18, %v291_v21  ;;  %v375_v50 = vld [vmem:[%s1123_s11 + $0x6] sm:$0x1]  ;;  %v386_v51 = vld [vmem:[%s1123_s11 + $0x7] sm:$0x1]  ;;  %s275_s30 = scalar_lea.vmem [#allocation8], %s552_s9  ;;  %s573_s18 = sshll.u32 %s409_s24, 7 }
  0x6f   : > { %s413_s8 = sshll.u32 %s275_s30, 4  ;;  %s1273_s12 = sld [smem:[#allocation21_spill]]  ;;  %s414_s8 = int_to_ptr.vmem [resolvable:$true] %s413_s8 }
  0x70   : > { %v299_v27 = vadd.f32 %v298_v22, %v295_v25  ;;  %s398_s29 = scalar_lea.sflag [#allocation4], %s1117_s27  ;;  %s772_s17 = scalar_lea.vmem %s414_s8, 128 }
  0x71   : > { %p773_p2 = scmp.ne.s32.totalorder %s414_s8, %s772_s17  ;;  %p1275_p8 = scmp.ne.s32.totalorder %s1261_s4, 0 }
  0x72   : > { %v303_v29 = vadd.f32 %v302_v26, %v299_v27  ;;  %s905_s9 = smov [#allocation8]  }
  0x73   : > { %p774_p9 = pnand %p773_p2, %p1275_p8  ;;  %s776_s3 = sshll.u32 %s905_s9, 4  ;;  %s777_s3 = int_to_ptr.vmem [resolvable:$false] %s776_s3 }
  0x74   : > { %v307_v31 = vadd.f32 %v306_v28, %v303_v29  ;;  %s778_s11 = scalar_lea.vmem %s777_s3, 256  ;;  %p779_p0 = scmp.lt.s32.totalorder %s414_s8, %s777_s3 }
  0x75   : > { %s1274_s6 = smov %s1273_s12  ;;  %s1181_s19 = scalar_lea.hbm %s1273_s12, %s573_s18 }
  0x76   : > { %v309_v32 = vsub.f32 %v307_v31, %v308_v30  ;;  %p775_p13 = pneg %p774_p9  ;;  %p780_p12 = scmp.lt.s32.totalorder %s778_s11, %s772_s17 }
  0x78   : > { %v310_v39 = vmul.f32 0.5, %v309_v32  ;;  %p781_p1 = por %p780_p12, %p779_p0 }
  0x7a   : > { %v311_v45 = vmul.f32 %v310_v39, %v277_v1  ;;  %v322_v46 = vmul.f32 %v321_v33, %v310_v39  ;;  %v333_v47 = vmul.f32 %v332_v34, %v310_v39  ;;  %v344_v48 = vmul.f32 %v343_v36, %v310_v39  ;;  %p782_p11 = pnand %p781_p1, %p775_p13 }
  0x7b   : > { %v355_v52 = vmul.f32 %v354_v37, %v310_v39  ;;  %v366_v53 = vmul.f32 %v365_v38, %v310_v39  ;;  %v377_v54 = vmul.f32 %v376_v40, %v310_v39  ;;  %v388_v55 = vmul.f32 %v387_v41, %v310_v39 }
  0x7c   : > { %v312_v56 = vsub.f32 %v276_v0, %v311_v45  ;;  %v323_v57 = vsub.f32 %v320_v35, %v322_v46  ;;  %v334_v58 = vsub.f32 %v331_v42, %v333_v47  ;;  %v345_v59 = vsub.f32 %v342_v43, %v344_v48 }
  0x7d   : > { %v356_v60 = vsub.f32 %v353_v44, %v355_v52  ;;  %v367_v61 = vsub.f32 %v364_v49, %v366_v53  ;;  %v378_v62 = vsub.f32 %v375_v50, %v377_v54  ;;  %v389_v63 = vsub.f32 %v386_v51, %v388_v55 }
  0x7e   : > { %v555_v2 = vadd.f32 -0.01, %v312_v56  ;;  %v315_v1 = vsub.f32 0.0, %v312_v56  ;;  %v557_v3 = vadd.f32 -0.01, %v323_v57  ;;  %v326_v4 = vsub.f32 0.0, %v323_v57 }
  0x7f   : > { %v559_v5 = vadd.f32 -0.01, %v334_v58  ;;  %v337_v6 = vsub.f32 0.0, %v334_v58  ;;  %v561_v7 = vadd.f32 -0.01, %v345_v59  ;;  %v348_v8 = vsub.f32 0.0, %v345_v59 }
  0x80   : > { %v314_v9 = vmax.f32 %v555_v2, 0.0  ;;  %v556_v10 = vadd.f32 -0.01, %v315_v1  ;;  %v325_v11 = vmax.f32 %v557_v3, 0.0  ;;  %v558_v12 = vadd.f32 -0.01, %v326_v4 }
  0x81   : > { %v336_v0 = vmax.f32 %v559_v5, 0.0  ;;  %v560_v13 = vadd.f32 -0.01, %v337_v6  ;;  %v347_v14 = vmax.f32 %v561_v7, 0.0  ;;  %v562_v15 = vadd.f32 -0.01, %v348_v8 }
  0x82   : > { %v317_v16 = vmax.f32 %v556_v10, 0.0  ;;  %v328_v17 = vmax.f32 %v558_v12, 0.0  ;;  %v563_v18 = vadd.f32 -0.01, %v356_v60  ;;  %v359_v19 = vsub.f32 0.0, %v356_v60 }
  0x83   : > { %v339_v20 = vmax.f32 %v560_v13, 0.0  ;;  %v350_v21 = vmax.f32 %v562_v15, 0.0  ;;  %v565_v22 = vadd.f32 -0.01, %v367_v61  ;;  %v370_v23 = vsub.f32 0.0, %v367_v61 }
  0x84   : > { %v318_v24 = vsub.f32 %v314_v9, %v317_v16  ;;  %v329_v25 = vsub.f32 %v325_v11, %v328_v17  ;;  %v358_v26 = vmax.f32 %v563_v18, 0.0  ;;  %v564_v27 = vadd.f32 -0.01, %v359_v19 }
  0x85   : > { %v340_v28 = vsub.f32 %v336_v0, %v339_v20  ;;  %v351_v29 = vsub.f32 %v347_v14, %v350_v21  ;;  %v369_v30 = vmax.f32 %v565_v22, 0.0  ;;  %v566_v31 = vadd.f32 -0.01, %v370_v23 }
  0x86   : > { %319 = vst [vmem:[%s275_s30] sm:$0x1] %v318_v24  ;;  %330 = vst [vmem:[%s275_s30 + $0x1] sm:$0x1] %v329_v25  ;;  %v361_v32 = vmax.f32 %v564_v27, 0.0  ;;  %v567_v33 = vadd.f32 -0.01, %v378_v62 }
  0x87   : > { %v381_v34 = vsub.f32 0.0, %v378_v62  ;;  %v569_v35 = vadd.f32 -0.01, %v389_v63  ;;  %341 = vst [vmem:[%s275_s30 + $0x2] sm:$0x1] %v340_v28  ;;  %v372_v36 = vmax.f32 %v566_v31, 0.0 }
  0x88   : > { %352 = vst [vmem:[%s275_s30 + $0x3] sm:$0x1] %v351_v29  ;;  %v392_v37 = vsub.f32 0.0, %v389_v63  ;;  %v362_v38 = vsub.f32 %v358_v26, %v361_v32  ;;  %v380_v39 = vmax.f32 %v567_v33, 0.0 }
  0x89   : > { %v568_v40 = vadd.f32 -0.01, %v381_v34  ;;  %v373_v41 = vsub.f32 %v369_v30, %v372_v36  ;;  %v391_v42 = vmax.f32 %v569_v35, 0.0 }
  0x8a   : > { %v570_v43 = vadd.f32 -0.01, %v392_v37  ;;  %363 = vst [vmem:[%s275_s30 + $0x4] sm:$0x1] %v362_v38 }
  0x8b   : > { %v383_v44 = vmax.f32 %v568_v40, 0.0  ;;  %374 = vst [vmem:[%s275_s30 + $0x5] sm:$0x1] %v373_v41 }
  0x8c   : > { %v394_v45 = vmax.f32 %v570_v43, 0.0 }
  0x8d   : > { %v384_v46 = vsub.f32 %v380_v39, %v383_v44 }
  0x8e   : > { %v395_v47 = vsub.f32 %v391_v42, %v394_v45 }
  0x8f   : > { %385 = vst [vmem:[%s275_s30 + $0x6] sm:$0x1] %v384_v46 }
  0x90   : > { %396 = vst [vmem:[%s275_s30 + $0x7] sm:$0x1] %v395_v47 }
  0x91   : > { %785 = shalt.err (!%p782_p11)
}
  0x92   : > { %s786_s10 = scalar_lea.hbm %s1181_s19, 128  ;;  %s790_s15 = scalar_lea.hbm %s1274_s6, 512 }
  0x93   : > { %p787_p3 = scmp.ne.s32.totalorder %s1181_s19, %s786_s10  ;;  %p791_p6 = scmp.lt.s32.totalorder %s1181_s19, %s1274_s6 }
  0x94   : > { %p792_p7 = scmp.lt.s32.totalorder %s790_s15, %s786_s10 }
  0x95   : > { %p788_p5 = pnand %p787_p3, %p1275_p8 }
  0x96   : > { %p793_p10 = por %p792_p7, %p791_p6 }
  0x97   : > { %p789_p4 = pneg %p788_p5 }
  0x99   : > { %p794_p2 = pnand %p793_p10, %p789_p4 }
  0x9b   : > { %797 = shalt.err (!%p794_p2)
}
  0x9c   : > { %582 = dma.vmem_to_hbm [thread:$0]  (%p1275_p8), %s414_s8, 128, %s1181_s19, %s398_s29  }
  0x9d PF: > { %s1276_s7 = sld [smem:[#allocation13_spill]]  ;;  %p599_p9 = scmp.ge.s32.totalorder %s900_s22, 2 }
  0x9e   : > { %s1277_s23 = sld [smem:[#allocation18_spill]] }
  0xa3   : > { %s425_s30 = sand.u32 1, %s1276_s7  }
  0xa4   : > { %p1278_p13 = scmp.ne.s32.totalorder %s1277_s23, 0  ;;  %s426_s24 = scalar_lea.sflag [#allocation4], %s425_s30 }
  0xa6   : > { %p595_p0 = pnand %p599_p9, %p1278_p13 }
  0xa8   : > { %p596_p12 = pneg %p595_p0 }
  0xaa   : > { %855 = dma.done.wait (%p596_p12), %s426_s24, 128  }
  0xab   : > { %857 = vsyncadd (%p596_p12), %s426_s24, 4294967168  ;;  %s22_s22 = sadd.s32 1, %s900_s22   ;;  %s1279_s4 = sld [smem:[#allocation14_spill]] }
  0xac   : > { %p19_p1 = scmp.ge.s32.totalorder %s22_s22, 6   ;;  %s1280_s17 = sld [smem:[#allocation19_spill]] }
  0xad   : > { %s1281_s18 = sld [smem:[#allocation15_spill]]  ;;  %s1284_s12 = smov %s864_s13 }
  0xae   : > { %s1282_s20 = sld [smem:[#allocation16_spill]]  ;;  %s1285_s13 = smov %s868_s14 }
  0xaf   : > { %s1283_s8 = sld [smem:[#allocation17_spill]]  ;;  %s1286_s14 = smov %s1086_s1 }
  0xb0   : > { %s1287_s15 = smov %s876_s16  ;;  %s1289_s19 = smov %s896_s21 }
  0xb1   : > { %s1288_s16 = smov %s1279_s4  ;;  %21 = sbr.rel (!%p19_p1) target bundleno = 14 (0xe), region = 101 }
  0xb5   : > { %s1290_s21 = smov %s1283_s8 }
  0xb6   :  { %431 = vsyncpa [#allocation3], 1 }
  0xb7   :  { %433 = vsyncpa [#allocation3 + $0x1], 1 }
  0xb8   :  { %434 = vsyncpa [#allocation6], 1 }
  0xb9   :  { %436 = vsyncpa [#allocation6 + $0x1], 1 }
  0xba   :  { %437 = vsyncpa [#allocation4], 1 }
  0xbb   :  { %439 = vsyncpa [#allocation4 + $0x1], 1 }

</bundles_post_ra>
